<compile_context>
chip_gen: v7x
topology: tpu7x:2x2x1
jax: 0.10.0
libtpu: 0.0.40
codegen_flags: <defaults>
</compile_context>

<pallas_src>
import numpy as np
import jax
import jax.numpy as jnp
from jax import lax
from jax.experimental import pallas as pl
from jax.experimental.pallas import tpu as pltpu

# ---------------- config (ModelArgs stand-in) ----------------
SAMPLES_NEEDED = 64          # inference_args.rate * inference_args.record_seconds
HIDDEN = 32                  # audio_encoder_args.hidden_size
CODEBOOK = 16                # quantizer codebook size (per stream type)
FFN = 4 * HIDDEN
EPS = 1e-6
NUM_STREAMS = 2              # temporal, depth


# ---------------- fused encoder kernel ----------------
def _encoder_kernel_factory(N, H, K):
    """Returns the fused kernel; N/H/K are static closure constants."""
    scale = float(H) ** -0.5

    def kernel(x_ref, wp_ref, cb_ref, cbsq_ref, emb_ref, g1_ref, wqkv_ref,
               wo_ref, g2_ref, w1_ref, w2_ref, bias_ref, o_ref):
        # ---- 1. input projection (Linear, bias=False), shared by both streams ----
        xp = jnp.dot(x_ref[...], wp_ref[...],
                     preferred_element_type=jnp.float32)              # (N, H)
        bias = bias_ref[...]                                          # (N, N) 0/-1e30
        col_k = lax.broadcasted_iota(jnp.int32, (N, K), 1)

        def rmsnorm(v, g):
            ms = jnp.mean(v * v, axis=-1, keepdims=True)
            return v * lax.rsqrt(ms + EPS) * g

        def one_stream(s):
            # ---- 2. vector quantization (L2-nearest code, first-match tie break) ----
            cb = cb_ref[s]                                            # (K, H)
            xc = lax.dot_general(xp, cb, (((1,), (1,)), ((), ())),
                                 preferred_element_type=jnp.float32)  # (N, K)
            # ||x||^2 dropped (constant per row, argmin-invariant)
            d = cbsq_ref[s] - 2.0 * xc                                # (N, K)
            dmin = jnp.min(d, axis=-1, keepdims=True)
            idx = jnp.min(jnp.where(d <= dmin, col_k, jnp.int32(K)),
                          axis=-1, keepdims=True)                     # (N, 1)
            onehot = (idx == col_k).astype(jnp.float32)               # (N, K)

            # ---- 3. transformer block (one-hot doubles as embedding lookup) ----
            xe = jnp.dot(onehot, emb_ref[s],
                         preferred_element_type=jnp.float32)          # (N, H)

            h = rmsnorm(xe, g1_ref[s])
            qkv = jnp.dot(h, wqkv_ref[s],
                          preferred_element_type=jnp.float32)         # (N, 3H)
            q = qkv[:, 0:H]
            k = qkv[:, H:2 * H]
            v = qkv[:, 2 * H:3 * H]

            s_att = lax.dot_general(q, k, (((1,), (1,)), ((), ())),
                                    preferred_element_type=jnp.float32) * scale
            s_att = s_att + bias                                      # block-diag causal mask
            s_att = s_att - jnp.max(s_att, axis=-1, keepdims=True)
            p = jnp.exp(s_att)
            p = p * pl.reciprocal(jnp.sum(p, axis=-1, keepdims=True), approx=False)
            attn = jnp.dot(jnp.dot(p, v, preferred_element_type=jnp.float32),
                           wo_ref[s], preferred_element_type=jnp.float32)
            xr = xe + attn

            h2 = rmsnorm(xr, g2_ref[s])
            f = jnp.dot(h2, w1_ref[s], preferred_element_type=jnp.float32)   # (N, F)
            f = f * (0.5 * (jnp.tanh(0.5 * f) + 1.0))                        # SiLU (tanh form)
            return xr + jnp.dot(f, w2_ref[s], preferred_element_type=jnp.float32)

        # temporal + depth streams, statically unrolled; fused output sum.
        o_ref[...] = one_stream(0) + one_stream(1)

    return kernel


# ---------------- StreamingJODIOEncoder.forward (streaming=False) ----------------
def jodio_encoder_forward(params, audio_tensor):
    B, T, D = audio_tensor.shape
    H = params["w_proj"].shape[1]
    K = params["codebook"].shape[1]
    N = B * T
    x2d = audio_tensor.reshape(N, D)

    cb_sq = params.get("cb_sq")
    if cb_sq is None:   # fallback if caller didn't precompute the code norms
        cb_sq = jnp.sum(params["codebook"] * params["codebook"], axis=-1)[:, None, :]

    # Block-diagonal causal mask over the flattened (B*T) token axis, built at
    # trace time as a pure numpy constant (no in-kernel iota/divide/compare).
    row = np.arange(N)[:, None]
    col = np.arange(N)[None, :]
    allowed = (row // T == col // T) & (col <= row)
    mask_bias = jnp.asarray(np.where(allowed, 0.0, -1e30), dtype=jnp.float32)

    kernel = _encoder_kernel_factory(N, H, K)
    vmem = lambda: pl.BlockSpec(memory_space=pltpu.MemorySpace.VMEM)

    out = pl.pallas_call(
        kernel,
        out_shape=jax.ShapeDtypeStruct((N, H), jnp.float32),
        in_specs=[vmem() for _ in range(12)],
        out_specs=vmem(),
    )(x2d, params["w_proj"], params["codebook"], cb_sq, params["emb"],
      params["g1"], params["wqkv"], params["wo"], params["g2"],
      params["w1"], params["w2"], mask_bias)

    # metadata-only reshape back to (B, T, H)
    return out.reshape(B, T, H)


# ---------------- parameter init (deterministic, synthetic) ----------------
def _stream_stack(key, shape, scale=0.02):
    return scale * jax.random.normal(key, (NUM_STREAMS,) + shape, jnp.float32)


def make_params(key):
    ks = jax.random.split(key, 7)
    codebook = jax.random.normal(ks[1], (NUM_STREAMS, CODEBOOK, HIDDEN), jnp.float32)
    return {
        "w_proj": 0.02 * jax.random.normal(ks[0], (SAMPLES_NEEDED, HIDDEN), jnp.float32),
        # temporal / depth stacked on a leading stream axis of size 2
        "codebook": codebook,
        "cb_sq": jnp.sum(codebook * codebook, axis=-1)[:, None, :],   # (2, 1, K) precomputed
        "emb": _stream_stack(ks[2], (CODEBOOK, HIDDEN)),
        "g1": jnp.ones((NUM_STREAMS, 1, HIDDEN), jnp.float32),
        "wqkv": _stream_stack(ks[3], (HIDDEN, 3 * HIDDEN)),           # packed Q|K|V
        "wo": _stream_stack(ks[4], (HIDDEN, HIDDEN)),
        "g2": jnp.ones((NUM_STREAMS, 1, HIDDEN), jnp.float32),
        "w1": _stream_stack(ks[5], (HIDDEN, FFN)),
        "w2": _stream_stack(ks[6], (FFN, HIDDEN)),
    }


if __name__ == "__main__":
    key = jax.random.PRNGKey(0)
    k_params, k_input = jax.random.split(key)

    params = make_params(k_params)
    B, T = 2, 8
    audio = jax.random.normal(k_input, (B, T, SAMPLES_NEEDED), jnp.float32)

    out = jax.jit(jodio_encoder_forward)(params, audio)
    out = jax.block_until_ready(out)
    assert out.shape == (B, T, HIDDEN) and out.dtype == jnp.float32
    assert bool(jnp.all(jnp.isfinite(out)))
    print("KERNEL_OK")
</pallas_src>

<mosaic_0001>
module attributes {stable_mosaic.version = 11 : i64} {
  func.func @kernel(%arg0: memref<16x64xf32, #tpu.memory_space<vmem>>, %arg1: memref<64x32xf32, #tpu.memory_space<vmem>>, %arg2: memref<2x16x32xf32, #tpu.memory_space<vmem>>, %arg3: memref<2x1x16xf32, #tpu.memory_space<vmem>>, %arg4: memref<2x16x32xf32, #tpu.memory_space<vmem>>, %arg5: memref<2x1x32xf32, #tpu.memory_space<vmem>>, %arg6: memref<2x32x96xf32, #tpu.memory_space<vmem>>, %arg7: memref<2x32x32xf32, #tpu.memory_space<vmem>>, %arg8: memref<2x1x32xf32, #tpu.memory_space<vmem>>, %arg9: memref<2x32x128xf32, #tpu.memory_space<vmem>>, %arg10: memref<2x128x32xf32, #tpu.memory_space<vmem>>, %arg11: memref<16x16xf32, #tpu.memory_space<vmem>>, %arg12: memref<16x32xf32, #tpu.memory_space<vmem>>) attributes {dimension_semantics = [], scalar_prefetch = 0 : i64, scratch_operands = 0 : i64, tpu.core_type = #tpu.core_type<tc>} {
    %c0 = arith.constant 0 : index
    %c0_0 = arith.constant 0 : index
    %0 = vector.load %arg0[%c0, %c0_0] : memref<16x64xf32, #tpu.memory_space<vmem>>, vector<16x64xf32>
    %c0_1 = arith.constant 0 : index
    %c0_2 = arith.constant 0 : index
    %1 = vector.load %arg1[%c0_1, %c0_2] : memref<64x32xf32, #tpu.memory_space<vmem>>, vector<64x32xf32>
    %cst = arith.constant dense<0.000000e+00> : vector<16x32xf32>
    %2 = tpu.matmul %0, %1, %cst {dimension_numbers = #tpu.dot_dimension_numbers<[1], [0], [0], [1], [0, 0, 1, 1], [], []>} : vector<16x64xf32>, vector<64x32xf32>, vector<16x32xf32> -> vector<16x32xf32>
    %c0_3 = arith.constant 0 : index
    %c0_4 = arith.constant 0 : index
    %3 = vector.load %arg11[%c0_3, %c0_4] : memref<16x16xf32, #tpu.memory_space<vmem>>, vector<16x16xf32>
    %4 = tpu.iota {dimensions = array<i32: 1>} : vector<16x16xi32>
    %c0_5 = arith.constant 0 : index
    %c0_6 = arith.constant 0 : index
    %c0_7 = arith.constant 0 : index
    %5 = vector.load %arg2[%c0_5, %c0_6, %c0_7] : memref<2x16x32xf32, #tpu.memory_space<vmem>>, vector<1x16x32xf32>
    %6 = vector.shape_cast %5 : vector<1x16x32xf32> to vector<16x32xf32>
    %cst_8 = arith.constant dense<0.000000e+00> : vector<16x16xf32>
    %7 = tpu.matmul %2, %6, %cst_8 {dimension_numbers = #tpu.dot_dimension_numbers<[1], [1], [0], [0], [0, 0, 1, 0], [], []>} : vector<16x32xf32>, vector<16x32xf32>, vector<16x16xf32> -> vector<16x16xf32>
    %c0_9 = arith.constant 0 : index
    %c0_10 = arith.constant 0 : index
    %c0_11 = arith.constant 0 : index
    %8 = vector.load %arg3[%c0_9, %c0_10, %c0_11] : memref<2x1x16xf32, #tpu.memory_space<vmem>>, vector<1x1x16xf32>
    %9 = vector.shape_cast %8 : vector<1x1x16xf32> to vector<1x16xf32>
    %cst_12 = arith.constant 2.000000e+00 : f32
    %10 = vector.broadcast %cst_12 : f32 to vector<16x16xf32>
    %11 = arith.mulf %10, %7 : vector<16x16xf32>
    %12 = vector.broadcast %9 : vector<1x16xf32> to vector<16x16xf32>
    %13 = arith.subf %12, %11 : vector<16x16xf32>
    %cst_13 = arith.constant dense<0x7F800000> : vector<16xf32>
    %14 = vector.multi_reduction <minimumf>, %13, %cst_13 [1] : vector<16x16xf32> to vector<16xf32>
    %15 = vector.shape_cast %14 : vector<16xf32> to vector<16x1xf32>
    %16 = vector.broadcast %15 : vector<16x1xf32> to vector<16x16xf32>
    %17 = arith.cmpf ole, %13, %16 : vector<16x16xf32>
    %c16_i32 = arith.constant 16 : i32
    %18 = vector.broadcast %c16_i32 : i32 to vector<16x16xi32>
    %19 = arith.select %17, %4, %18 : vector<16x16xi1>, vector<16x16xi32>
    %cst_14 = arith.constant dense<2147483647> : vector<16xi32>
    %20 = vector.multi_reduction <minsi>, %19, %cst_14 [1] : vector<16x16xi32> to vector<16xi32>
    %21 = vector.shape_cast %20 : vector<16xi32> to vector<16x1xi32>
    %22 = vector.broadcast %21 : vector<16x1xi32> to vector<16x16xi32>
    %23 = arith.cmpi eq, %22, %4 : vector<16x16xi32>
    %24 = arith.extui %23 : vector<16x16xi1> to vector<16x16xi32>
    %25 = arith.sitofp %24 : vector<16x16xi32> to vector<16x16xf32>
    %c0_15 = arith.constant 0 : index
    %c0_16 = arith.constant 0 : index
    %c0_17 = arith.constant 0 : index
    %26 = vector.load %arg4[%c0_15, %c0_16, %c0_17] : memref<2x16x32xf32, #tpu.memory_space<vmem>>, vector<1x16x32xf32>
    %27 = vector.shape_cast %26 : vector<1x16x32xf32> to vector<16x32xf32>
    %cst_18 = arith.constant dense<0.000000e+00> : vector<16x32xf32>
    %28 = tpu.matmul %25, %27, %cst_18 {dimension_numbers = #tpu.dot_dimension_numbers<[1], [0], [0], [1], [0, 0, 1, 1], [], []>} : vector<16x16xf32>, vector<16x32xf32>, vector<16x32xf32> -> vector<16x32xf32>
    %c0_19 = arith.constant 0 : index
    %c0_20 = arith.constant 0 : index
    %c0_21 = arith.constant 0 : index
    %29 = vector.load %arg5[%c0_19, %c0_20, %c0_21] : memref<2x1x32xf32, #tpu.memory_space<vmem>>, vector<1x1x32xf32>
    %30 = vector.shape_cast %29 : vector<1x1x32xf32> to vector<1x32xf32>
    %31 = arith.mulf %28, %28 : vector<16x32xf32>
    %cst_22 = arith.constant dense<0.000000e+00> : vector<16xf32>
    %32 = vector.multi_reduction <add>, %31, %cst_22 [1] : vector<16x32xf32> to vector<16xf32>
    %33 = vector.shape_cast %32 : vector<16xf32> to vector<16x1xf32>
    %cst_23 = arith.constant 3.200000e+01 : f32
    %34 = vector.broadcast %cst_23 : f32 to vector<16x1xf32>
    %35 = arith.divf %33, %34 : vector<16x1xf32>
    %cst_24 = arith.constant 9.99999997E-7 : f32
    %36 = vector.broadcast %cst_24 : f32 to vector<16x1xf32>
    %37 = arith.addf %35, %36 : vector<16x1xf32>
    %38 = math.rsqrt %37 : vector<16x1xf32>
    %39 = vector.broadcast %38 : vector<16x1xf32> to vector<16x32xf32>
    %40 = arith.mulf %28, %39 : vector<16x32xf32>
    %41 = vector.broadcast %30 : vector<1x32xf32> to vector<16x32xf32>
    %42 = arith.mulf %40, %41 : vector<16x32xf32>
    %c0_25 = arith.constant 0 : index
    %c0_26 = arith.constant 0 : index
    %c0_27 = arith.constant 0 : index
    %43 = vector.load %arg6[%c0_25, %c0_26, %c0_27] : memref<2x32x96xf32, #tpu.memory_space<vmem>>, vector<1x32x96xf32>
    %44 = vector.shape_cast %43 : vector<1x32x96xf32> to vector<32x96xf32>
    %cst_28 = arith.constant dense<0.000000e+00> : vector<16x96xf32>
    %45 = tpu.matmul %42, %44, %cst_28 {dimension_numbers = #tpu.dot_dimension_numbers<[1], [0], [0], [1], [0, 0, 1, 1], [], []>} : vector<16x32xf32>, vector<32x96xf32>, vector<16x96xf32> -> vector<16x96xf32>
    %46 = vector.extract_strided_slice %45 {offsets = [0, 0], sizes = [16, 32], strides = [1, 1]} : vector<16x96xf32> to vector<16x32xf32>
    %47 = vector.extract_strided_slice %45 {offsets = [0, 32], sizes = [16, 32], strides = [1, 1]} : vector<16x96xf32> to vector<16x32xf32>
    %48 = vector.extract_strided_slice %45 {offsets = [0, 64], sizes = [16, 32], strides = [1, 1]} : vector<16x96xf32> to vector<16x32xf32>
    %cst_29 = arith.constant dense<0.000000e+00> : vector<16x16xf32>
    %49 = tpu.matmul %46, %47, %cst_29 {dimension_numbers = #tpu.dot_dimension_numbers<[1], [1], [0], [0], [0, 0, 1, 0], [], []>} : vector<16x32xf32>, vector<16x32xf32>, vector<16x16xf32> -> vector<16x16xf32>
    %cst_30 = arith.constant 0.176776692 : f32
    %50 = vector.broadcast %cst_30 : f32 to vector<16x16xf32>
    %51 = arith.mulf %49, %50 : vector<16x16xf32>
    %52 = arith.addf %51, %3 : vector<16x16xf32>
    %cst_31 = arith.constant dense<0xFF800000> : vector<16xf32>
    %53 = vector.multi_reduction <maximumf>, %52, %cst_31 [1] : vector<16x16xf32> to vector<16xf32>
    %54 = vector.shape_cast %53 : vector<16xf32> to vector<16x1xf32>
    %55 = vector.broadcast %54 : vector<16x1xf32> to vector<16x16xf32>
    %56 = arith.subf %52, %55 : vector<16x16xf32>
    %57 = math.exp %56 : vector<16x16xf32>
    %cst_32 = arith.constant dense<0.000000e+00> : vector<16xf32>
    %58 = vector.multi_reduction <add>, %57, %cst_32 [1] : vector<16x16xf32> to vector<16xf32>
    %59 = vector.shape_cast %58 : vector<16xf32> to vector<16x1xf32>
    %60 = tpu.reciprocal %59 : vector<16x1xf32> -> vector<16x1xf32>
    %61 = vector.broadcast %60 : vector<16x1xf32> to vector<16x16xf32>
    %62 = arith.mulf %57, %61 : vector<16x16xf32>
    %cst_33 = arith.constant dense<0.000000e+00> : vector<16x32xf32>
    %63 = tpu.matmul %62, %48, %cst_33 {dimension_numbers = #tpu.dot_dimension_numbers<[1], [0], [0], [1], [0, 0, 1, 1], [], []>} : vector<16x16xf32>, vector<16x32xf32>, vector<16x32xf32> -> vector<16x32xf32>
    %c0_34 = arith.constant 0 : index
    %c0_35 = arith.constant 0 : index
    %c0_36 = arith.constant 0 : index
    %64 = vector.load %arg7[%c0_34, %c0_35, %c0_36] : memref<2x32x32xf32, #tpu.memory_space<vmem>>, vector<1x32x32xf32>
    %65 = vector.shape_cast %64 : vector<1x32x32xf32> to vector<32x32xf32>
    %cst_37 = arith.constant dense<0.000000e+00> : vector<16x32xf32>
    %66 = tpu.matmul %63, %65, %cst_37 {dimension_numbers = #tpu.dot_dimension_numbers<[1], [0], [0], [1], [0, 0, 1, 1], [], []>} : vector<16x32xf32>, vector<32x32xf32>, vector<16x32xf32> -> vector<16x32xf32>
    %67 = arith.addf %28, %66 : vector<16x32xf32>
    %c0_38 = arith.constant 0 : index
    %c0_39 = arith.constant 0 : index
    %c0_40 = arith.constant 0 : index
    %68 = vector.load %arg8[%c0_38, %c0_39, %c0_40] : memref<2x1x32xf32, #tpu.memory_space<vmem>>, vector<1x1x32xf32>
    %69 = vector.shape_cast %68 : vector<1x1x32xf32> to vector<1x32xf32>
    %70 = arith.mulf %67, %67 : vector<16x32xf32>
    %cst_41 = arith.constant dense<0.000000e+00> : vector<16xf32>
    %71 = vector.multi_reduction <add>, %70, %cst_41 [1] : vector<16x32xf32> to vector<16xf32>
    %72 = vector.shape_cast %71 : vector<16xf32> to vector<16x1xf32>
    %cst_42 = arith.constant 3.200000e+01 : f32
    %73 = vector.broadcast %cst_42 : f32 to vector<16x1xf32>
    %74 = arith.divf %72, %73 : vector<16x1xf32>
    %cst_43 = arith.constant 9.99999997E-7 : f32
    %75 = vector.broadcast %cst_43 : f32 to vector<16x1xf32>
    %76 = arith.addf %74, %75 : vector<16x1xf32>
    %77 = math.rsqrt %76 : vector<16x1xf32>
    %78 = vector.broadcast %77 : vector<16x1xf32> to vector<16x32xf32>
    %79 = arith.mulf %67, %78 : vector<16x32xf32>
    %80 = vector.broadcast %69 : vector<1x32xf32> to vector<16x32xf32>
    %81 = arith.mulf %79, %80 : vector<16x32xf32>
    %c0_44 = arith.constant 0 : index
    %c0_45 = arith.constant 0 : index
    %c0_46 = arith.constant 0 : index
    %82 = vector.load %arg9[%c0_44, %c0_45, %c0_46] : memref<2x32x128xf32, #tpu.memory_space<vmem>>, vector<1x32x128xf32>
    %83 = vector.shape_cast %82 : vector<1x32x128xf32> to vector<32x128xf32>
    %cst_47 = arith.constant dense<0.000000e+00> : vector<16x128xf32>
    %84 = tpu.matmul %81, %83, %cst_47 {dimension_numbers = #tpu.dot_dimension_numbers<[1], [0], [0], [1], [0, 0, 1, 1], [], []>} : vector<16x32xf32>, vector<32x128xf32>, vector<16x128xf32> -> vector<16x128xf32>
    %cst_48 = arith.constant 5.000000e-01 : f32
    %85 = vector.broadcast %cst_48 : f32 to vector<16x128xf32>
    %86 = arith.mulf %85, %84 : vector<16x128xf32>
    %87 = math.tanh %86 : vector<16x128xf32>
    %cst_49 = arith.constant 1.000000e+00 : f32
    %88 = vector.broadcast %cst_49 : f32 to vector<16x128xf32>
    %89 = arith.addf %87, %88 : vector<16x128xf32>
    %cst_50 = arith.constant 5.000000e-01 : f32
    %90 = vector.broadcast %cst_50 : f32 to vector<16x128xf32>
    %91 = arith.mulf %90, %89 : vector<16x128xf32>
    %92 = arith.mulf %84, %91 : vector<16x128xf32>
    %c0_51 = arith.constant 0 : index
    %c0_52 = arith.constant 0 : index
    %c0_53 = arith.constant 0 : index
    %93 = vector.load %arg10[%c0_51, %c0_52, %c0_53] : memref<2x128x32xf32, #tpu.memory_space<vmem>>, vector<1x128x32xf32>
    %94 = vector.shape_cast %93 : vector<1x128x32xf32> to vector<128x32xf32>
    %cst_54 = arith.constant dense<0.000000e+00> : vector<16x32xf32>
    %95 = tpu.matmul %92, %94, %cst_54 {dimension_numbers = #tpu.dot_dimension_numbers<[1], [0], [0], [1], [0, 0, 1, 1], [], []>} : vector<16x128xf32>, vector<128x32xf32>, vector<16x32xf32> -> vector<16x32xf32>
    %96 = arith.addf %67, %95 : vector<16x32xf32>
    %c1 = arith.constant 1 : index
    %c0_55 = arith.constant 0 : index
    %c0_56 = arith.constant 0 : index
    %97 = vector.load %arg2[%c1, %c0_55, %c0_56] : memref<2x16x32xf32, #tpu.memory_space<vmem>>, vector<1x16x32xf32>
    %98 = vector.shape_cast %97 : vector<1x16x32xf32> to vector<16x32xf32>
    %cst_57 = arith.constant dense<0.000000e+00> : vector<16x16xf32>
    %99 = tpu.matmul %2, %98, %cst_57 {dimension_numbers = #tpu.dot_dimension_numbers<[1], [1], [0], [0], [0, 0, 1, 0], [], []>} : vector<16x32xf32>, vector<16x32xf32>, vector<16x16xf32> -> vector<16x16xf32>
    %c1_58 = arith.constant 1 : index
    %c0_59 = arith.constant 0 : index
    %c0_60 = arith.constant 0 : index
    %100 = vector.load %arg3[%c1_58, %c0_59, %c0_60] : memref<2x1x16xf32, #tpu.memory_space<vmem>>, vector<1x1x16xf32>
    %101 = vector.shape_cast %100 : vector<1x1x16xf32> to vector<1x16xf32>
    %cst_61 = arith.constant 2.000000e+00 : f32
    %102 = vector.broadcast %cst_61 : f32 to vector<16x16xf32>
    %103 = arith.mulf %102, %99 : vector<16x16xf32>
    %104 = vector.broadcast %101 : vector<1x16xf32> to vector<16x16xf32>
    %105 = arith.subf %104, %103 : vector<16x16xf32>
    %cst_62 = arith.constant dense<0x7F800000> : vector<16xf32>
    %106 = vector.multi_reduction <minimumf>, %105, %cst_62 [1] : vector<16x16xf32> to vector<16xf32>
    %107 = vector.shape_cast %106 : vector<16xf32> to vector<16x1xf32>
    %108 = vector.broadcast %107 : vector<16x1xf32> to vector<16x16xf32>
    %109 = arith.cmpf ole, %105, %108 : vector<16x16xf32>
    %c16_i32_63 = arith.constant 16 : i32
    %110 = vector.broadcast %c16_i32_63 : i32 to vector<16x16xi32>
    %111 = arith.select %109, %4, %110 : vector<16x16xi1>, vector<16x16xi32>
    %cst_64 = arith.constant dense<2147483647> : vector<16xi32>
    %112 = vector.multi_reduction <minsi>, %111, %cst_64 [1] : vector<16x16xi32> to vector<16xi32>
    %113 = vector.shape_cast %112 : vector<16xi32> to vector<16x1xi32>
    %114 = vector.broadcast %113 : vector<16x1xi32> to vector<16x16xi32>
    %115 = arith.cmpi eq, %114, %4 : vector<16x16xi32>
    %116 = arith.extui %115 : vector<16x16xi1> to vector<16x16xi32>
    %117 = arith.sitofp %116 : vector<16x16xi32> to vector<16x16xf32>
    %c1_65 = arith.constant 1 : index
    %c0_66 = arith.constant 0 : index
    %c0_67 = arith.constant 0 : index
    %118 = vector.load %arg4[%c1_65, %c0_66, %c0_67] : memref<2x16x32xf32, #tpu.memory_space<vmem>>, vector<1x16x32xf32>
    %119 = vector.shape_cast %118 : vector<1x16x32xf32> to vector<16x32xf32>
    %cst_68 = arith.constant dense<0.000000e+00> : vector<16x32xf32>
    %120 = tpu.matmul %117, %119, %cst_68 {dimension_numbers = #tpu.dot_dimension_numbers<[1], [0], [0], [1], [0, 0, 1, 1], [], []>} : vector<16x16xf32>, vector<16x32xf32>, vector<16x32xf32> -> vector<16x32xf32>
    %c1_69 = arith.constant 1 : index
    %c0_70 = arith.constant 0 : index
    %c0_71 = arith.constant 0 : index
    %121 = vector.load %arg5[%c1_69, %c0_70, %c0_71] : memref<2x1x32xf32, #tpu.memory_space<vmem>>, vector<1x1x32xf32>
    %122 = vector.shape_cast %121 : vector<1x1x32xf32> to vector<1x32xf32>
    %123 = arith.mulf %120, %120 : vector<16x32xf32>
    %cst_72 = arith.constant dense<0.000000e+00> : vector<16xf32>
    %124 = vector.multi_reduction <add>, %123, %cst_72 [1] : vector<16x32xf32> to vector<16xf32>
    %125 = vector.shape_cast %124 : vector<16xf32> to vector<16x1xf32>
    %cst_73 = arith.constant 3.200000e+01 : f32
    %126 = vector.broadcast %cst_73 : f32 to vector<16x1xf32>
    %127 = arith.divf %125, %126 : vector<16x1xf32>
    %cst_74 = arith.constant 9.99999997E-7 : f32
    %128 = vector.broadcast %cst_74 : f32 to vector<16x1xf32>
    %129 = arith.addf %127, %128 : vector<16x1xf32>
    %130 = math.rsqrt %129 : vector<16x1xf32>
    %131 = vector.broadcast %130 : vector<16x1xf32> to vector<16x32xf32>
    %132 = arith.mulf %120, %131 : vector<16x32xf32>
    %133 = vector.broadcast %122 : vector<1x32xf32> to vector<16x32xf32>
    %134 = arith.mulf %132, %133 : vector<16x32xf32>
    %c1_75 = arith.constant 1 : index
    %c0_76 = arith.constant 0 : index
    %c0_77 = arith.constant 0 : index
    %135 = vector.load %arg6[%c1_75, %c0_76, %c0_77] : memref<2x32x96xf32, #tpu.memory_space<vmem>>, vector<1x32x96xf32>
    %136 = vector.shape_cast %135 : vector<1x32x96xf32> to vector<32x96xf32>
    %cst_78 = arith.constant dense<0.000000e+00> : vector<16x96xf32>
    %137 = tpu.matmul %134, %136, %cst_78 {dimension_numbers = #tpu.dot_dimension_numbers<[1], [0], [0], [1], [0, 0, 1, 1], [], []>} : vector<16x32xf32>, vector<32x96xf32>, vector<16x96xf32> -> vector<16x96xf32>
    %138 = vector.extract_strided_slice %137 {offsets = [0, 0], sizes = [16, 32], strides = [1, 1]} : vector<16x96xf32> to vector<16x32xf32>
    %139 = vector.extract_strided_slice %137 {offsets = [0, 32], sizes = [16, 32], strides = [1, 1]} : vector<16x96xf32> to vector<16x32xf32>
    %140 = vector.extract_strided_slice %137 {offsets = [0, 64], sizes = [16, 32], strides = [1, 1]} : vector<16x96xf32> to vector<16x32xf32>
    %cst_79 = arith.constant dense<0.000000e+00> : vector<16x16xf32>
    %141 = tpu.matmul %138, %139, %cst_79 {dimension_numbers = #tpu.dot_dimension_numbers<[1], [1], [0], [0], [0, 0, 1, 0], [], []>} : vector<16x32xf32>, vector<16x32xf32>, vector<16x16xf32> -> vector<16x16xf32>
    %cst_80 = arith.constant 0.176776692 : f32
    %142 = vector.broadcast %cst_80 : f32 to vector<16x16xf32>
    %143 = arith.mulf %141, %142 : vector<16x16xf32>
    %144 = arith.addf %143, %3 : vector<16x16xf32>
    %cst_81 = arith.constant dense<0xFF800000> : vector<16xf32>
    %145 = vector.multi_reduction <maximumf>, %144, %cst_81 [1] : vector<16x16xf32> to vector<16xf32>
    %146 = vector.shape_cast %145 : vector<16xf32> to vector<16x1xf32>
    %147 = vector.broadcast %146 : vector<16x1xf32> to vector<16x16xf32>
    %148 = arith.subf %144, %147 : vector<16x16xf32>
    %149 = math.exp %148 : vector<16x16xf32>
    %cst_82 = arith.constant dense<0.000000e+00> : vector<16xf32>
    %150 = vector.multi_reduction <add>, %149, %cst_82 [1] : vector<16x16xf32> to vector<16xf32>
    %151 = vector.shape_cast %150 : vector<16xf32> to vector<16x1xf32>
    %152 = tpu.reciprocal %151 : vector<16x1xf32> -> vector<16x1xf32>
    %153 = vector.broadcast %152 : vector<16x1xf32> to vector<16x16xf32>
    %154 = arith.mulf %149, %153 : vector<16x16xf32>
    %cst_83 = arith.constant dense<0.000000e+00> : vector<16x32xf32>
    %155 = tpu.matmul %154, %140, %cst_83 {dimension_numbers = #tpu.dot_dimension_numbers<[1], [0], [0], [1], [0, 0, 1, 1], [], []>} : vector<16x16xf32>, vector<16x32xf32>, vector<16x32xf32> -> vector<16x32xf32>
    %c1_84 = arith.constant 1 : index
    %c0_85 = arith.constant 0 : index
    %c0_86 = arith.constant 0 : index
    %156 = vector.load %arg7[%c1_84, %c0_85, %c0_86] : memref<2x32x32xf32, #tpu.memory_space<vmem>>, vector<1x32x32xf32>
    %157 = vector.shape_cast %156 : vector<1x32x32xf32> to vector<32x32xf32>
    %cst_87 = arith.constant dense<0.000000e+00> : vector<16x32xf32>
    %158 = tpu.matmul %155, %157, %cst_87 {dimension_numbers = #tpu.dot_dimension_numbers<[1], [0], [0], [1], [0, 0, 1, 1], [], []>} : vector<16x32xf32>, vector<32x32xf32>, vector<16x32xf32> -> vector<16x32xf32>
    %159 = arith.addf %120, %158 : vector<16x32xf32>
    %c1_88 = arith.constant 1 : index
    %c0_89 = arith.constant 0 : index
    %c0_90 = arith.constant 0 : index
    %160 = vector.load %arg8[%c1_88, %c0_89, %c0_90] : memref<2x1x32xf32, #tpu.memory_space<vmem>>, vector<1x1x32xf32>
    %161 = vector.shape_cast %160 : vector<1x1x32xf32> to vector<1x32xf32>
    %162 = arith.mulf %159, %159 : vector<16x32xf32>
    %cst_91 = arith.constant dense<0.000000e+00> : vector<16xf32>
    %163 = vector.multi_reduction <add>, %162, %cst_91 [1] : vector<16x32xf32> to vector<16xf32>
    %164 = vector.shape_cast %163 : vector<16xf32> to vector<16x1xf32>
    %cst_92 = arith.constant 3.200000e+01 : f32
    %165 = vector.broadcast %cst_92 : f32 to vector<16x1xf32>
    %166 = arith.divf %164, %165 : vector<16x1xf32>
    %cst_93 = arith.constant 9.99999997E-7 : f32
    %167 = vector.broadcast %cst_93 : f32 to vector<16x1xf32>
    %168 = arith.addf %166, %167 : vector<16x1xf32>
    %169 = math.rsqrt %168 : vector<16x1xf32>
    %170 = vector.broadcast %169 : vector<16x1xf32> to vector<16x32xf32>
    %171 = arith.mulf %159, %170 : vector<16x32xf32>
    %172 = vector.broadcast %161 : vector<1x32xf32> to vector<16x32xf32>
    %173 = arith.mulf %171, %172 : vector<16x32xf32>
    %c1_94 = arith.constant 1 : index
    %c0_95 = arith.constant 0 : index
    %c0_96 = arith.constant 0 : index
    %174 = vector.load %arg9[%c1_94, %c0_95, %c0_96] : memref<2x32x128xf32, #tpu.memory_space<vmem>>, vector<1x32x128xf32>
    %175 = vector.shape_cast %174 : vector<1x32x128xf32> to vector<32x128xf32>
    %cst_97 = arith.constant dense<0.000000e+00> : vector<16x128xf32>
    %176 = tpu.matmul %173, %175, %cst_97 {dimension_numbers = #tpu.dot_dimension_numbers<[1], [0], [0], [1], [0, 0, 1, 1], [], []>} : vector<16x32xf32>, vector<32x128xf32>, vector<16x128xf32> -> vector<16x128xf32>
    %cst_98 = arith.constant 5.000000e-01 : f32
    %177 = vector.broadcast %cst_98 : f32 to vector<16x128xf32>
    %178 = arith.mulf %177, %176 : vector<16x128xf32>
    %179 = math.tanh %178 : vector<16x128xf32>
    %cst_99 = arith.constant 1.000000e+00 : f32
    %180 = vector.broadcast %cst_99 : f32 to vector<16x128xf32>
    %181 = arith.addf %179, %180 : vector<16x128xf32>
    %cst_100 = arith.constant 5.000000e-01 : f32
    %182 = vector.broadcast %cst_100 : f32 to vector<16x128xf32>
    %183 = arith.mulf %182, %181 : vector<16x128xf32>
    %184 = arith.mulf %176, %183 : vector<16x128xf32>
    %c1_101 = arith.constant 1 : index
    %c0_102 = arith.constant 0 : index
    %c0_103 = arith.constant 0 : index
    %185 = vector.load %arg10[%c1_101, %c0_102, %c0_103] : memref<2x128x32xf32, #tpu.memory_space<vmem>>, vector<1x128x32xf32>
    %186 = vector.shape_cast %185 : vector<1x128x32xf32> to vector<128x32xf32>
    %cst_104 = arith.constant dense<0.000000e+00> : vector<16x32xf32>
    %187 = tpu.matmul %184, %186, %cst_104 {dimension_numbers = #tpu.dot_dimension_numbers<[1], [0], [0], [1], [0, 0, 1, 1], [], []>} : vector<16x128xf32>, vector<128x32xf32>, vector<16x32xf32> -> vector<16x32xf32>
    %188 = arith.addf %159, %187 : vector<16x32xf32>
    %189 = arith.addf %96, %188 : vector<16x32xf32>
    %c0_105 = arith.constant 0 : index
    %c0_106 = arith.constant 0 : index
    %190 = vector.load %arg12[%c0_105, %c0_106] : memref<16x32xf32, #tpu.memory_space<vmem>>, vector<16x32xf32>
    tpu.vector_store %arg12[%c0_105, %c0_106], %189 {strides = array<i32>} : memref<16x32xf32, #tpu.memory_space<vmem>>, vector<16x32xf32>,
    return
  }
}

</mosaic_0001>

<bundles_post_ra>
// kernel: jodio_encoder_forward.1
= control target key start
LH: loop header
LB: loop body
LE: loop exit
PB: predicated region body
PF: predicated region fallthrough
CT: control target
= control target key end

     0   :  { %vm52_vm0 = vcmask 523264   ;;  %s3007_s0 = inlined_call_operand.vmem [shape: f32[16,64], index: 0, kind: input, shape index: {}]   ;;  %s3008_s1 = inlined_call_operand.vmem [shape: f32[64,32], index: 1, kind: input, shape index: {}]   ;;  %s3009_s2 = inlined_call_operand.vmem [shape: f32[2,16,32], index: 2, kind: input, shape index: {}]   ;;  %s3010_s3 = inlined_call_operand.vmem [shape: f32[2,1,16], index: 3, kind: input, shape index: {}]   ;;  %s3011_s4 = inlined_call_operand.vmem [shape: f32[2,16,32], index: 4, kind: input, shape index: {}]   ;;  %s3012_s5 = inlined_call_operand.vmem [shape: f32[2,1,32], index: 5, kind: input, shape index: {}]   ;;  %s3013_s6 = inlined_call_operand.vmem [shape: f32[2,32,96], index: 6, kind: input, shape index: {}]   ;;  %s3014_s7 = inlined_call_operand.vmem [shape: f32[2,32,32], index: 7, kind: input, shape index: {}]   ;;  %s3015_s8 = inlined_call_operand.vmem [shape: f32[2,1,32], index: 8, kind: input, shape index: {}]   ;;  %s3016_s9 = inlined_call_operand.vmem [shape: f32[2,32,128], index: 9, kind: input, shape index: {}]   ;;  %s3017_s10 = inlined_call_operand.vmem [shape: f32[2,128,32], index: 10, kind: input, shape index: {}]   ;;  %s3018_s11 = inlined_call_operand.vmem [shape: f32[16,16], index: 11, kind: input, shape index: {}]   ;;  %s3019_s12 = inlined_call_operand.hbm [shape: f32[16,32], index: 12, kind: output, shape index: {}]  }
   0x1   :  { %v44_v0 = vld [vmem:[%s3008_s1] sm:$0xff]  ;;  %v45_v1 = vld [vmem:[%s3008_s1 + $0x8] sm:$0xff]  ;;  %v46_v2 = vld [vmem:[%s3008_s1 + $0x10] sm:$0xff] }
   0x2   :  { %v2254_v3 = vpack.c.bf16 %v45_v1, %v44_v0  ;;  %v47_v4 = vld [vmem:[%s3008_s1 + $0x18] sm:$0xff]  ;;  %v48_v6 = vld [vmem:[%s3008_s1 + $0x20] sm:$0xff]  ;;  %v49_v7 = vld [vmem:[%s3008_s1 + $0x28] sm:$0xff] }
   0x3   :  { %v2258_v5 = vpack.c.bf16 %v47_v4, %v46_v2  ;;  %v42_v8 = vld [vmem:[%s3007_s0] sm:$0xff]  ;;  %v2262_v9 = vpack.c.bf16 %v49_v7, %v48_v6 }
   0x4   :  { %2255 = vmatprep.subr.bf16.mxu1 %v2254_v3  ;;  %2059 = vmatprep.mubr.msk.f32.mxu1 %vm52_vm0, %v42_v8 }
   0x5   :  { %2257 = vmatpush3.bf16.msra.mxu1 %v2254_v3 }
   0x6   :  { %2259 = vmatprep.subr.bf16.mxu1 %v2258_v5 }
   0x7   :  { %17 = vsyncpa [#allocation3], 0  ;;  %v50_v10 = vld [vmem:[%s3008_s1 + $0x30] sm:$0xff]  ;;  %v51_v11 = vld [vmem:[%s3008_s1 + $0x38] sm:$0xff]  ;;  %vm140_vm1 = vcmask 261120   ;;  %vm239_vm3 = vcmask 130048   ;;  %v136_v29 = vlaneseq }
   0x8   :  { %v2266_v12 = vpack.c.bf16 %v51_v11, %v50_v10  ;;  %v138_v13 = vld [vmem:[%s3009_s2] sm:$0xff]  ;;  %v139_v14 = vld [vmem:[%s3009_s2 + $0x8] sm:$0xff]  ;;  %vm2625_vm2 = vmpackc.low %vm140_vm1, %vm140_vm1  ;;  %v2518_v61 = vmov 0.0   ;;  %s2519_s23 = smov 96  }
   0x9   :  { %2261 = vmatpush3.bf16.msra.mxu1 %v2258_v5  ;;  %v2270_v15 = vpack.c.bf16 %v139_v14, %v138_v13  ;;  %v43_v17 = vld [vmem:[%s3007_s0 + $0x8] sm:$0xff]  ;;  %v1852_v22 = vld [vmem:[%s3010_s3] ss:$0 sm:$0xff]  ;;  %v2650_v30 = vand.u32 127, %v136_v29  ;;  %v398_v11 = vld [vmem:[%s3013_s6 + $0x18] sm:$0xff] }
   0xa   :  { %2263 = vmatprep.subr.bf16.mxu1 %v2262_v9  ;;  %v286_v49 = vld [vmem:[%s3011_s4] sm:$0xff]  ;;  %v287_v50 = vld [vmem:[%s3011_s4 + $0x8] sm:$0xff] }
   0xb   :  { %v2276_v51 = vpack.c.bf16 %v287_v50, %v286_v49  ;;  %v395_v7 = vld [vmem:[%s3013_s6] sm:$0xff]  ;;  %v396_v8 = vld [vmem:[%s3013_s6 + $0x8] sm:$0xff] }
   0xc   :  { %v2280_v10 = vpack.c.bf16 %v396_v8, %v395_v7 }
   0xd   :  { %2265 = vmatpush3.bf16.msra.mxu1 %v2262_v9  ;;  %v397_v9 = vld [vmem:[%s3013_s6 + $0x10] sm:$0xff] }
   0xe   :  { %2267 = vmatprep.subr.bf16.mxu1 %v2266_v12 }
  0x11   :  { %2269 = vmatpush3.bf16.msra.mxu1 %v2266_v12  ;;  %v2284_v12 = vpack.c.bf16 %v398_v11, %v397_v9 }
  0x12   :  { %2272 = vmatprep.subr.msk.bf16.mxu1 %vm2625_vm2, %v2270_v15 }
  0x14   :  { %2060 = vmatmul.mubr.msk.f32.vlgmr.msra.gmra.mrb[0].mxu1 %vm52_vm0, %v43_v17 }
  0x1a   :  { %2275 = vmatpush3.bf16.xpose.msk.msra.mxu1 %vm2625_vm2, %v2270_v15 }
  0x1b   :  { %2277 = vmatprep.subr.bf16.mxu1 %v2276_v51 }
  0xe7   :  { %v2637_v18 = vpop.f32.mrb[0].mxu1 }
  0xe8   :  { %v2639_v19 = vpop.f32.mrb[1].mxu1 }
  0xe9   :  { %2066 = vmatprep.mubr.msk.f32.mxu1 %vm140_vm1, %v2639_v19 }
  0xea   :  { %2067 = vmatmul.mubr.msk.f32.vlgmr.msra.gmra.mrb[2].mxu1 %vm140_vm1, %v2637_v18 }
  0xeb   :  { %2279 = vmatpush3.bf16.msra.mxu1 %v2276_v51 }
  0xec   :  { %2281 = vmatprep.subr.bf16.mxu1 %v2280_v10 }
 0x1bd   :  { %v2068_v20 = vpop.f32.mrb[2].mxu1 }
 0x1be   :  { %v219_v21 = vpop.f32.mrb[3].mxu1  ;;  %v230_v23 = vmul.f32 2.0, %v2068_v20 }
 0x1bf   :  { %v229_v24 = vmul.f32 2.0, %v219_v21 }
 0x1c0   :  { %v238_v27 = vsub.f32 %v1852_v22, %v230_v23 }
 0x1c1   :  { %v237_v25 = vsub.f32 %v1852_v22, %v229_v24  ;;  %v1857_v24 = vld [vmem:[%s3012_s5] ss:$0 sm:$0xff] }
 0x1c2   :  { %v243_v28 = vsel %vm239_vm3, %v238_v27, inf }
 0x1c3   :  { %v240_v26 = vsel %vm239_vm3, %v237_v25, inf }
 0x1c4   :  { %241 = vmin.xlane.f32.xlu0 %v240_v26 }
 0x1c8   :  { %244 = vmin.xlane.f32.xlu0 %v243_v28 }
 0x251   :  { %v242_v31 = vpop.xlane.xlu0 %241 }
 0x252   :  { %vm246_vm4 = vcmp.le.f32.partialorder %v237_v25, %v242_v31 }
 0x253   :  { %v248_v32 = vsel %vm246_vm4, %v2650_v30, 16 }
 0x254   :  { %v250_v33 = vsel %vm239_vm3, %v248_v32, 2147483647 }
 0x255   :  { %v245_v34 = vpop.xlane.xlu0 %244  ;;  %v252_v35 = vshra.s32 %v250_v33, 16  ;;  %v251_v41 = vand.u32 65535, %v250_v33 }
 0x256   :  { %vm247_vm5 = vcmp.le.f32.partialorder %v238_v27, %v245_v34 }
 0x257   :  { %v249_v36 = vsel %vm247_vm5, %v2650_v30, 16  ;;  %v254_v37 = vcvt.s32.f32 %v252_v35  ;;  %v253_v43 = vcvt.s32.f32 %v251_v41 }
 0x258   :  { %v265_v38 = vsel %vm239_vm3, %v249_v36, 2147483647 }
 0x259   :  { %255 = vmin.xlane.f32.xlu1 %v254_v37  ;;  %v267_v39 = vshra.s32 %v265_v38, 16  ;;  %v266_v44 = vand.u32 65535, %v265_v38 }
 0x25b   :  { %v269_v40 = vcvt.s32.f32 %v267_v39  ;;  %v268_v47 = vcvt.s32.f32 %v266_v44  ;;  %v2707_v39 = vld [vmem:[%s3018_s11] sm:$0xff] }
 0x25d   :  { %270 = vmin.xlane.f32.xlu1 %v269_v40 }
 0x2e6   :  { %v256_v42 = vpop.xlane.xlu1 %255 }
 0x2e7   :  { %vm257_vm6 = vcmp.eq.f32.partialorder %v254_v37, %v256_v42  ;;  %v262_v52 = vcvt.f32.s32 %v256_v42  ;;  %v2712_v42 = vld [vmem:[%s3018_s11 + $0x8] sm:$0xff]  ;;  %s2520_s11 = smov 64  }
 0x2e8   :  { %v258_v45 = vsel %vm257_vm6, %v253_v43, inf }
 0x2e9   :  { %259 = vmin.xlane.f32.xlu0 %v258_v45  ;;  %v263_v54 = vshll.u32 %v262_v52, 16 }
 0x2ea   :  { %v271_v46 = vpop.xlane.xlu1 %270 }
 0x2eb   :  { %vm272_vm7 = vcmp.eq.f32.partialorder %v269_v40, %v271_v46  ;;  %v277_v55 = vcvt.f32.s32 %v271_v46 }
 0x2ec   :  { %v273_v48 = vsel %vm272_vm7, %v268_v47, inf }
 0x2ed   :  { %274 = vmin.xlane.f32.xlu1 %v273_v48  ;;  %v278_v59 = vshll.u32 %v277_v55, 16 }
 0x376   :  { %v260_v53 = vpop.xlane.xlu0 %259 }
 0x377   :  { %v261_v56 = vcvt.f32.s32 %v260_v53 }
 0x379   :  { %v264_v57 = vadd.s32 %v263_v54, %v261_v56 }
 0x37a   :  { %v275_v58 = vpop.xlane.xlu1 %274 }
 0x37b   :  { %v276_v60 = vcvt.f32.s32 %v275_v58  ;;  %vm280_vm8 = vcmp.eq.s32.totalorder %v264_v57, %v2650_v30  ;;  %v682_v57 = vld [vmem:[%s3014_s7] sm:$0xff]  ;;  %v683_v58 = vld [vmem:[%s3014_s7 + $0x8] sm:$0xff] }
 0x37c   :  { %v1853_v62 = vsel %vm280_vm8, 1.0, %v2518_v61 }
 0x37d   :  { %v279_v63 = vadd.s32 %v278_v59, %v276_v60  ;;  %2073 = vmatprep.mubr.msk.f32.mxu1 %vm239_vm3, %v1853_v62  ;;  %v684_v59 = vld [vmem:[%s3014_s7 + $0x10] sm:$0xff]  ;;  %v2298_v60 = vpack.c.bf16 %v683_v58, %v682_v57  ;;  %v685_v62 = vld [vmem:[%s3014_s7 + $0x18] sm:$0xff] }
 0x37e   :  { %v895_v57 = vld [vmem:[%s3017_s10 + $0x30] sm:$0xff]  ;;  %v896_v58 = vld [vmem:[%s3017_s10 + $0x38] sm:$0xff] }
 0x37f   :  { %vm281_vm9 = vcmp.eq.s32.totalorder %v279_v63, %v2650_v30  ;;  %v2302_v63 = vpack.c.bf16 %v685_v62, %v684_v59  ;;  %v2326_v59 = vpack.c.bf16 %v896_v58, %v895_v57  ;;  %v899_v62 = vld [vmem:[%s3017_s10 + $0x50] sm:$0xff] }
 0x380   :  { %v1854_v0 = vsel %vm281_vm9, 1.0, %v2518_v61 }
 0x381   :  { %2074 = vmatmul.mubr.msk.f32.vlgmr.msra.gmra.mrb[4].mxu1 %vm239_vm3, %v1854_v0 }
 0x382   :  { %2283 = vmatpush3.bf16.msra.mxu1 %v2280_v10 }
 0x383   :  { %2285 = vmatprep.subr.bf16.mxu1 %v2284_v12 }
 0x386   :  { %2287 = vmatpush3.bf16.msra.mxu1 %v2284_v12 }
 0x454   :  { %v2668_v1 = vpop.f32.mrb[4].mxu1 }
 0x455   :  { %v2670_v2 = vpop.f32.mrb[5].mxu1  ;;  %v371_v3 = vmul.f32 %v2668_v1, %v2668_v1 }
 0x456   :  { %v370_v4 = vmul.f32 %v2670_v2, %v2670_v2 }
 0x457   :  { %v375_v5 = vsel %vm140_vm1, %v371_v3, 0.0 }
 0x458   :  { %376 = vadd.xlane.f32.xlu1 %v375_v5  ;;  %v372_v6 = vsel %vm140_vm1, %v370_v4, 0.0 }
 0x459   :  { %373 = vadd.xlane.f32.xlu0 %v372_v6 }
 0x4e5   :  { %v377_v13 = vpop.xlane.xlu1 %376 }
 0x4e6   :  { %v380_v14 = vmul.f32 0.03125, %v377_v13  ;;  %v374_v15 = vpop.xlane.xlu0 %373 }
 0x4e7   :  { %v379_v17 = vmul.f32 0.03125, %v374_v15 }
 0x4e8   :  { %v382_v20 = vadd.f32 1e-06, %v380_v14 }
 0x4e9   :  { %v381_v21 = vadd.f32 1e-06, %v379_v17 }
 0x4ea   :  { %2454 = vrsqrt.f32 %v382_v20 }
 0x4eb   :  { %2456 = vrsqrt.f32 %v381_v21 }
 0x4f4   :  { %v2455_v22 = vpop.eup %2454 }
 0x4f5   :  { %v2457_v23 = vpop.eup %2456  ;;  %v386_v25 = vmul.f32 %v2455_v22, %v2668_v1 }
 0x4f6   :  { %v385_v26 = vmul.f32 %v2457_v23, %v2670_v2 }
 0x4f7   :  { %v394_v28 = vmul.f32 %v1857_v24, %v386_v25 }
 0x4f8   :  { %v393_v27 = vmul.f32 %v1857_v24, %v385_v26  ;;  %v796_v26 = vld [vmem:[%s3016_s9 + $0x10] sm:$0xff] }
 0x4fa   :  { %2084 = vmatprep.mubr.msk.f32.mxu1 %vm140_vm1, %v393_v27  ;;  %v797_v27 = vld [vmem:[%s3016_s9 + $0x18] sm:$0xff] }
 0x4fb   :  { %2085 = vmatmul.mubr.msk.f32.vlgmr.msra.gmra.mrb[6].mxu1 %vm140_vm1, %v394_v28  ;;  %v2310_v28 = vpack.c.bf16 %v797_v27, %v796_v26 }
 0x5ce   :  { %v2086_v29 = vpop.f32.mrb[6].mxu1 }
 0x5cf   :  { %v471_v31 = vpop.f32.mrb[7].mxu1 }
 0x5d0   :  { %v2439_v32 = vpack.i.bf16 %v2086_v29, %v471_v31  ;;  %2091 = vmatprep.mubr.msk.f32.mxu0 %vm140_vm1, %v471_v31  ;;  %v1872_v31 = vld [vmem:[%s3009_s2 + $0x18] sm:$0xff] }
 0x5d2   :  { %2435 = vrot.lane.b32.xlu0 %v2439_v32, %s2519_s23 }
 0x644   :  { %v2436_v33 = vpop.permute.xlu0 %2435 }
 0x645   :  { %v2438_v34 = vunpack.i.h.bf16 %v2436_v33  ;;  %v2437_v35 = vunpack.i.l.bf16 %v2436_v33  ;;  %v889_v33 = vld [vmem:[%s3017_s10] sm:$0xff] }
 0x647   :  { %v2288_v36 = vpack.c.bf16 %v2438_v34, %v2437_v35  ;;  %v890_v34 = vld [vmem:[%s3017_s10 + $0x8] sm:$0xff]  ;;  %v891_v35 = vld [vmem:[%s3017_s10 + $0x10] sm:$0xff] }
 0x649   :  { %2290 = vmatprep.subr.msk.bf16.mxu0 %vm2625_vm2, %v2288_v36 }
 0x64a   :  { %2293 = vmatpush3.bf16.xpose.msk.msra.mxu0 %vm2625_vm2, %v2288_v36  ;;  %v2314_v36 = vpack.c.bf16 %v890_v34, %v889_v33 }
 0x64b   :  { %2299 = vmatprep.subr.bf16.mxu0 %v2298_v60 }
 0x651   :  { %2092 = vmatmul.mubr.msk.f32.vlgmr.msra.gmra.mrb[0].mxu0 %vm140_vm1, %v2086_v29  ;;  %v1871_v29 = vld [vmem:[%s3009_s2 + $0x10] sm:$0xff] }
 0x652   :  { %2301 = vmatpush3.bf16.msra.mxu0 %v2298_v60  ;;  %v897_v60 = vld [vmem:[%s3017_s10 + $0x40] sm:$0xff] }
 0x653   :  { %2303 = vmatprep.subr.bf16.mxu0 %v2302_v63 }
 0x656   :  { %2305 = vmatpush3.bf16.msra.mxu0 %v2302_v63  ;;  %v900_v63 = vld [vmem:[%s3017_s10 + $0x58] sm:$0xff] }
 0x657   :  { %2315 = vmatprep.subr.bf16.mxu0 %v2314_v36 }
 0x724   :  { %v2093_v37 = vpop.f32.mrb[0].mxu0 }
 0x725   :  { %v560_v38 = vpop.f32.mrb[1].mxu0  ;;  %v570_v40 = vmul.f32 0.17677669, %v2093_v37  ;;  %v892_v37 = vld [vmem:[%s3017_s10 + $0x18] sm:$0xff] }
 0x726   :  { %v569_v41 = vmul.f32 0.17677669, %v560_v38  ;;  %v2318_v38 = vpack.c.bf16 %v892_v37, %v891_v35 }
 0x727   :  { %v572_v45 = vadd.f32 %v570_v40, %v2712_v42  ;;  %v893_v40 = vld [vmem:[%s3017_s10 + $0x20] sm:$0xff] }
 0x728   :  { %v571_v43 = vadd.f32 %v569_v41, %v2707_v39  ;;  %v894_v41 = vld [vmem:[%s3017_s10 + $0x28] sm:$0xff] }
 0x729   :  { %v576_v46 = vsel %vm239_vm3, %v572_v45, -inf }
 0x72a   :  { %v573_v44 = vsel %vm239_vm3, %v571_v43, -inf }
 0x72b   :  { %574 = vmax.xlane.f32.xlu1 %v573_v44 }
 0x72f   :  { %577 = vmax.xlane.f32.xlu1 %v576_v46 }
 0x7b8   :  { %v575_v47 = vpop.xlane.xlu1 %574 }
 0x7b9   :  { %v579_v48 = vsub.f32 %v571_v43, %v575_v47  ;;  %v2322_v43 = vpack.c.bf16 %v894_v41, %v893_v40 }
 0x7bb   :  { %v581_v51 = vmul.f32 1.442695, %v579_v48 }
 0x7bc   :  { %v578_v49 = vpop.xlane.xlu1 %577 }
 0x7bd   :  { %v580_v50 = vsub.f32 %v572_v45, %v578_v49 }
 0x7bf   :  { %v583_v52 = vmul.f32 1.442695, %v580_v50 }
 0x7c1   :  { %2458 = vpow2.f32 %v583_v52  ;;  %v1868_v52 = vld [vmem:[%s3015_s8] ss:$0 sm:$0xff] }
 0x7c2   :  { %2460 = vpow2.f32 %v581_v51 }
 0x7cb   :  { %v2459_v53 = vpop.eup %2458 }
 0x7cc   :  { %v588_v54 = vsel %vm239_vm3, %v2459_v53, 0.0  ;;  %v2461_v55 = vpop.eup %2460 }
 0x7cd   :  { %589 = vadd.xlane.f32.xlu1 %v588_v54  ;;  %v585_v56 = vsel %vm239_vm3, %v2461_v55, 0.0 }
 0x7d1   :  { %586 = vadd.xlane.f32.xlu1 %v585_v56 }
 0x7e2   :  { %2440 = vrot.lane.b32.xlu1 %v2439_v32, %s2520_s11  ;;  %v2346_v32 = vpack.c.bf16 %v1872_v31, %v1871_v29 }
 0x85a   :  { %v590_v0 = vpop.xlane.xlu1 %589 }
 0x85b   :  { %2462 = vrcp.f32 %v590_v0  ;;  %v2334_v0 = vpack.c.bf16 %v900_v63, %v899_v62 }
 0x85e   :  { %v587_v3 = vpop.xlane.xlu1 %586 }
 0x85f   :  { %2464 = vrcp.f32 %v587_v3  ;;  %v901_v3 = vld [vmem:[%s3017_s10 + $0x60] sm:$0xff] }
 0x862   :  { %v2441_v4 = vpop.permute.xlu1 %2440 }
 0x863   :  { %v2443_v5 = vunpack.i.h.bf16 %v2441_v4  ;;  %v2442_v6 = vunpack.i.l.bf16 %v2441_v4  ;;  %v902_v4 = vld [vmem:[%s3017_s10 + $0x68] sm:$0xff] }
 0x865   :  { %v2294_v7 = vpack.c.bf16 %v2443_v5, %v2442_v6  ;;  %v2463_v8 = vpop.eup %2462  ;;  %v2338_v5 = vpack.c.bf16 %v902_v4, %v901_v3  ;;  %v903_v6 = vld [vmem:[%s3017_s10 + $0x70] sm:$0xff] }
 0x866   :  { %v594_v11 = vmul.f32 %v2463_v8, %v2459_v53 }
 0x867   :  { %2295 = vmatprep.subr.bf16.mxu1 %v2294_v7 }
 0x868   :  { %2297 = vmatpush3.bf16.msra.mxu1 %v2294_v7  ;;  %v904_v7 = vld [vmem:[%s3017_s10 + $0x78] sm:$0xff] }
 0x869   :  { %v2465_v9 = vpop.eup %2464  ;;  %v2342_v8 = vpack.c.bf16 %v904_v7, %v903_v6 }
 0x86a   :  { %v593_v10 = vmul.f32 %v2465_v9, %v2461_v55 }
 0x86c   :  { %2098 = vmatprep.mubr.msk.f32.mxu1 %vm239_vm3, %v593_v10 }
 0x86d   :  { %2099 = vmatmul.mubr.msk.f32.vlgmr.msra.gmra.mrb[8].mxu1 %vm239_vm3, %v594_v11 }
 0x940   :  { %v2100_v12 = vpop.f32.mrb[8].mxu1 }
 0x941   :  { %v673_v13 = vpop.f32.mrb[9].mxu1 }
 0x942   :  { %2109 = vmatprep.mubr.msk.f32.mxu0 %vm140_vm1, %v673_v13 }
 0x943   :  { %2110 = vmatmul.mubr.msk.f32.vlgmr.msra.gmra.mrb[2].mxu0 %vm140_vm1, %v2100_v12 }
 0x944   :  { %2317 = vmatpush3.bf16.msra.mxu0 %v2314_v36 }
 0x945   :  { %2319 = vmatprep.subr.bf16.mxu0 %v2318_v38 }
 0x948   :  { %2321 = vmatpush3.bf16.msra.mxu0 %v2318_v38 }
 0x949   :  { %2323 = vmatprep.subr.bf16.mxu0 %v2322_v43 }
 0x94c   :  { %2325 = vmatpush3.bf16.msra.mxu0 %v2322_v43 }
 0x94d   :  { %2327 = vmatprep.subr.bf16.mxu0 %v2326_v59 }
 0x950   :  { %2329 = vmatpush3.bf16.msra.mxu0 %v2326_v59 }
 0xa16   :  { %v2111_v14 = vpop.f32.mrb[2].mxu0 }
 0xa17   :  { %v2738_v15 = vadd.f32 %v2111_v14, %v2668_v1  ;;  %v758_v17 = vpop.f32.mrb[3].mxu0  ;;  %v794_v1 = vld [vmem:[%s3016_s9] sm:$0xff] }
 0xa18   :  { %v2741_v20 = vadd.f32 %v758_v17, %v2670_v2  ;;  %v795_v2 = vld [vmem:[%s3016_s9 + $0x8] sm:$0xff]  ;;  %v1878_v17 = vld [vmem:[%s3010_s3 + $0x1] ss:$0 sm:$0xff] }
 0xa19   :  { %v771_v21 = vmul.f32 %v2738_v15, %v2738_v15  ;;  %v2306_v25 = vpack.c.bf16 %v795_v2, %v794_v1 }
 0xa1a   :  { %v770_v22 = vmul.f32 %v2741_v20, %v2741_v20 }
 0xa1b   :  { %v775_v23 = vsel %vm140_vm1, %v771_v21, 0.0  ;;  %2307 = vmatprep.subr.bf16.mxu1 %v2306_v25 }
 0xa1c   :  { %776 = vadd.xlane.f32.xlu1 %v775_v23  ;;  %v772_v24 = vsel %vm140_vm1, %v770_v22, 0.0  ;;  %2309 = vmatpush3.bf16.msra.mxu1 %v2306_v25 }
 0xa1d   :  { %773 = vadd.xlane.f32.xlu0 %v772_v24  ;;  %2311 = vmatprep.subr.bf16.mxu1 %v2310_v28 }
 0xa20   :  { %2313 = vmatpush3.bf16.msra.mxu1 %v2310_v28 }
 0xa21   :  { %2348 = vmatprep.subr.msk.bf16.mxu1 %vm2625_vm2, %v2346_v32 }
 0xaa9   :  { %v777_v44 = vpop.xlane.xlu1 %776 }
 0xaaa   :  { %v779_v45 = vmul.f32 0.03125, %v777_v44  ;;  %v774_v46 = vpop.xlane.xlu0 %773 }
 0xaab   :  { %v778_v47 = vmul.f32 0.03125, %v774_v46 }
 0xaac   :  { %v781_v48 = vadd.f32 1e-06, %v779_v45 }
 0xaad   :  { %v780_v49 = vadd.f32 1e-06, %v778_v47 }
 0xaae   :  { %2466 = vrsqrt.f32 %v781_v48 }
 0xaaf   :  { %2468 = vrsqrt.f32 %v780_v49 }
 0xab8   :  { %v2467_v50 = vpop.eup %2466 }
 0xab9   :  { %v2469_v51 = vpop.eup %2468  ;;  %v785_v53 = vmul.f32 %v2467_v50, %v2738_v15 }
 0xaba   :  { %v784_v54 = vmul.f32 %v2469_v51, %v2741_v20 }
 0xabb   :  { %v793_v56 = vmul.f32 %v1868_v52, %v785_v53 }
 0xabc   :  { %v792_v55 = vmul.f32 %v1868_v52, %v784_v54  ;;  %v1881_v54 = vld [vmem:[%s3011_s4 + $0x10] sm:$0xff] }
 0xabe   :  { %2120 = vmatprep.mubr.msk.f32.mxu1 %vm140_vm1, %v792_v55  ;;  %v1882_v55 = vld [vmem:[%s3011_s4 + $0x18] sm:$0xff] }
 0xabf   :  { %2121 = vmatmul.mubr.msk.f32.vlgmr.msra.gmra.mrb[10].mxu1 %vm140_vm1, %v793_v56  ;;  %v2352_v56 = vpack.c.bf16 %v1882_v55, %v1881_v54 }
 0xac0   :  { %2351 = vmatpush3.bf16.xpose.msk.msra.mxu1 %vm2625_vm2, %v2346_v32  ;;  %2162 = vmatprep.mubr.msk.f32.mxu1 %vm140_vm1, %v2639_v19  ;;  %v898_v19 = vld [vmem:[%s3017_s10 + $0x48] sm:$0xff] }
 0xac1   :  { %2353 = vmatprep.subr.bf16.mxu1 %v2352_v56 }
 0xac7   :  { %2163 = vmatmul.mubr.msk.f32.vlgmr.msra.gmra.mrb[12].mxu1 %vm140_vm1, %v2637_v18  ;;  %v2330_v18 = vpack.c.bf16 %v898_v19, %v897_v60 }
 0xac8   :  { %2355 = vmatpush3.bf16.msra.mxu1 %v2352_v56 }
 0xac9   :  { %2331 = vmatprep.subr.bf16.mxu0 %v2330_v18 }
 0xaca   :  { %2333 = vmatpush3.bf16.msra.mxu0 %v2330_v18 }
 0xacb   :  { %2335 = vmatprep.subr.bf16.mxu0 %v2334_v0 }
 0xace   :  { %2337 = vmatpush3.bf16.msra.mxu0 %v2334_v0 }
 0xacf   :  { %2339 = vmatprep.subr.bf16.mxu0 %v2338_v5 }
 0xad2   :  { %2341 = vmatpush3.bf16.msra.mxu0 %v2338_v5 }
 0xad3   :  { %2343 = vmatprep.subr.bf16.mxu0 %v2342_v8 }
 0xad6   :  { %2345 = vmatpush3.bf16.msra.mxu0 %v2342_v8 }
 0xb92   :  { %v2122_v9 = vpop.f32.mrb[10].mxu1 }
 0xb93   :  { %v880_v10 = vmul.f32 0.5, %v2122_v9  ;;  %v870_v11 = vpop.f32.mrb[11].mxu1 }
 0xb94   :  { %v879_v12 = vmul.f32 0.5, %v870_v11 }
 0xb95   :  { %2470 = vtanh.f32 %v880_v10 }
 0xb96   :  { %2472 = vtanh.f32 %v879_v12  ;;  %v1889_v12 = vld [vmem:[%s3013_s6 + $0x30] sm:$0xff] }
 0xb9a   :  { %v2164_v13 = vpop.f32.mrb[12].mxu1 }
 0xb9b   :  { %v1057_v14 = vpop.f32.mrb[13].mxu1  ;;  %v1069_v21 = vmul.f32 2.0, %v2164_v13 }
 0xb9c   :  { %v1068_v22 = vmul.f32 2.0, %v1057_v14  ;;  %v1890_v14 = vld [vmem:[%s3013_s6 + $0x38] sm:$0xff] }
 0xb9d   :  { %v1077_v26 = vsub.f32 %v1878_v17, %v1069_v21 }
 0xb9e   :  { %v1076_v23 = vsub.f32 %v1878_v17, %v1068_v22  ;;  %v2360_v17 = vpack.c.bf16 %v1890_v14, %v1889_v12 }
 0xb9f   :  { %v2471_v24 = vpop.eup %2470  ;;  %v1081_v31 = vsel %vm239_vm3, %v1077_v26, inf }
 0xba0   :  { %v2473_v1 = vpop.eup %2472  ;;  %v884_v2 = vadd.f32 1.0, %v2471_v24  ;;  %v1078_v25 = vsel %vm239_vm3, %v1076_v23, inf }
 0xba1   :  { %v883_v27 = vadd.f32 1.0, %v2473_v1  ;;  %1079 = vmin.xlane.f32.xlu0 %v1078_v25 }
 0xba2   :  { %v886_v28 = vmul.f32 0.5, %v884_v2 }
 0xba3   :  { %v885_v29 = vmul.f32 0.5, %v883_v27  ;;  %v1886_v27 = vld [vmem:[%s3012_s5 + $0x1] ss:$0 sm:$0xff] }
 0xba4   :  { %v888_v33 = vmul.f32 %v2122_v9, %v886_v28 }
 0xba5   :  { %v887_v32 = vmul.f32 %v885_v29, %v870_v11  ;;  %1082 = vmin.xlane.f32.xlu0 %v1081_v31 }
 0xba7   :  { %2155 = vmatprep.mubr.f32.mxu0 %v887_v32 }
 0xba8   :  { %2156 = vmatmul.mubr.f32.vlgmr.msra.gmra.mrb[4].mxu0 %v888_v33 }
 0xc2e   :  { %v1080_v34 = vpop.xlane.xlu0 %1079 }
 0xc2f   :  { %vm1084_vm10 = vcmp.le.f32.partialorder %v1076_v23, %v1080_v34 }
 0xc30   :  { %v1086_v35 = vsel %vm1084_vm10, %v2650_v30, 16 }
 0xc31   :  { %v1088_v36 = vsel %vm239_vm3, %v1086_v35, 2147483647 }
 0xc32   :  { %v1083_v37 = vpop.xlane.xlu0 %1082  ;;  %v1090_v38 = vshra.s32 %v1088_v36, 16  ;;  %v1089_v46 = vand.u32 65535, %v1088_v36 }
 0xc33   :  { %vm1085_vm11 = vcmp.le.f32.partialorder %v1077_v26, %v1083_v37 }
 0xc34   :  { %v1087_v40 = vsel %vm1085_vm11, %v2650_v30, 16  ;;  %v1092_v41 = vcvt.s32.f32 %v1090_v38  ;;  %v1091_v48 = vcvt.s32.f32 %v1089_v46 }
 0xc35   :  { %v1103_v43 = vsel %vm239_vm3, %v1087_v40, 2147483647 }
 0xc36   :  { %1093 = vmin.xlane.f32.xlu0 %v1092_v41  ;;  %v1105_v44 = vshra.s32 %v1103_v43, 16  ;;  %v1104_v49 = vand.u32 65535, %v1103_v43 }
 0xc38   :  { %v1107_v45 = vcvt.s32.f32 %v1105_v44  ;;  %v1106_v52 = vcvt.s32.f32 %v1104_v49 }
 0xc3a   :  { %1108 = vmin.xlane.f32.xlu0 %v1107_v45 }
 0xcc3   :  { %v1094_v47 = vpop.xlane.xlu0 %1093 }
 0xcc4   :  { %vm1095_vm12 = vcmp.eq.f32.partialorder %v1092_v41, %v1094_v47  ;;  %v1100_v57 = vcvt.f32.s32 %v1094_v47 }
 0xcc5   :  { %v1096_v50 = vsel %vm1095_vm12, %v1091_v48, inf }
 0xcc6   :  { %1097 = vmin.xlane.f32.xlu0 %v1096_v50  ;;  %v1101_v59 = vshll.u32 %v1100_v57, 16 }
 0xcc7   :  { %v1109_v51 = vpop.xlane.xlu0 %1108 }
 0xcc8   :  { %vm1110_vm13 = vcmp.eq.f32.partialorder %v1107_v45, %v1109_v51  ;;  %v1115_v60 = vcvt.f32.s32 %v1109_v51 }
 0xcc9   :  { %v1111_v53 = vsel %vm1110_vm13, %v1106_v52, inf }
 0xcca   :  { %1112 = vmin.xlane.f32.xlu1 %v1111_v53  ;;  %v1116_v63 = vshll.u32 %v1115_v60, 16 }
 0xd53   :  { %v1098_v58 = vpop.xlane.xlu0 %1097 }
 0xd54   :  { %v1099_v19 = vcvt.f32.s32 %v1098_v58  ;;  %v1900_v58 = vld [vmem:[%s3014_s7 + $0x28] sm:$0xff] }
 0xd56   :  { %v1102_v18 = vadd.s32 %v1101_v59, %v1099_v19  ;;  %v1901_v59 = vld [vmem:[%s3014_s7 + $0x30] sm:$0xff]  ;;  %v1902_v19 = vld [vmem:[%s3014_s7 + $0x38] sm:$0xff] }
 0xd57   :  { %v1113_v62 = vpop.xlane.xlu1 %1112 }
 0xd58   :  { %v1114_v0 = vcvt.f32.s32 %v1113_v62  ;;  %vm1118_vm14 = vcmp.eq.s32.totalorder %v1102_v18, %v2650_v30  ;;  %v2378_v18 = vpack.c.bf16 %v1902_v19, %v1901_v59  ;;  %v1926_v59 = vld [vmem:[%s3017_s10 + $0xe8] sm:$0xff]  ;;  %v1927_v19 = vld [vmem:[%s3017_s10 + $0xf0] sm:$0xff] }
 0xd59   :  { %v1879_v3 = vsel %vm1118_vm14, 1.0, %v2518_v61 }
 0xd5a   :  { %v1117_v4 = vadd.s32 %v1116_v63, %v1114_v0  ;;  %2169 = vmatprep.mubr.msk.f32.mxu1 %vm239_vm3, %v1879_v3 }
 0xd5c   :  { %vm1119_vm15 = vcmp.eq.s32.totalorder %v1117_v4, %v2650_v30  ;;  %v1887_v30 = vld [vmem:[%s3013_s6 + $0x20] sm:$0xff] }
 0xd5d   :  { %v1880_v5 = vsel %vm1119_vm15, 1.0, %v2518_v61  ;;  %v1888_v61 = vld [vmem:[%s3013_s6 + $0x28] sm:$0xff] }
 0xd5e   :  { %2170 = vmatmul.mubr.msk.f32.vlgmr.msra.gmra.mrb[14].mxu1 %vm239_vm3, %v1880_v5  ;;  %v2356_v13 = vpack.c.bf16 %v1888_v61, %v1887_v30 }
 0xd60   :  { %2357 = vmatprep.subr.bf16.mxu1 %v2356_v13 }
 0xd61   :  { %2359 = vmatpush3.bf16.msra.mxu1 %v2356_v13 }
 0xd62   :  { %2361 = vmatprep.subr.bf16.mxu1 %v2360_v17 }
 0xd65   :  { %2363 = vmatpush3.bf16.msra.mxu1 %v2360_v17 }
 0xe31   :  { %v2851_v6 = vpop.f32.mrb[14].mxu1 }
 0xe32   :  { %v2853_v7 = vpop.f32.mrb[15].mxu1  ;;  %v1211_v8 = vmul.f32 %v2851_v6, %v2851_v6 }
 0xe33   :  { %v1210_v9 = vmul.f32 %v2853_v7, %v2853_v7 }
 0xe34   :  { %v1215_v10 = vsel %vm140_vm1, %v1211_v8, 0.0 }
 0xe35   :  { %1216 = vadd.xlane.f32.xlu1 %v1215_v10  ;;  %v1212_v11 = vsel %vm140_vm1, %v1210_v9, 0.0 }
 0xe36   :  { %1213 = vadd.xlane.f32.xlu0 %v1212_v11 }
 0xec2   :  { %v1217_v21 = vpop.xlane.xlu1 %1216 }
 0xec3   :  { %v1219_v22 = vmul.f32 0.03125, %v1217_v21  ;;  %v1214_v23 = vpop.xlane.xlu0 %1213 }
 0xec4   :  { %v1218_v24 = vmul.f32 0.03125, %v1214_v23 }
 0xec5   :  { %v1221_v1 = vadd.f32 1e-06, %v1219_v22 }
 0xec6   :  { %v1220_v2 = vadd.f32 1e-06, %v1218_v24 }
 0xec7   :  { %2474 = vrsqrt.f32 %v1221_v1  ;;  %v1909_v1 = vld [vmem:[%s3016_s9 + $0x30] sm:$0xff] }
 0xec8   :  { %2476 = vrsqrt.f32 %v1220_v2 }
 0xed1   :  { %v2475_v25 = vpop.eup %2474 }
 0xed2   :  { %v2477_v26 = vpop.eup %2476  ;;  %v1225_v28 = vmul.f32 %v2475_v25, %v2851_v6  ;;  %v1910_v25 = vld [vmem:[%s3016_s9 + $0x38] sm:$0xff] }
 0xed3   :  { %v1224_v29 = vmul.f32 %v2477_v26, %v2853_v7  ;;  %v2386_v26 = vpack.c.bf16 %v1910_v25, %v1909_v1 }
 0xed4   :  { %v1233_v32 = vmul.f32 %v1886_v27, %v1225_v28  ;;  %v1914_v28 = vld [vmem:[%s3017_s10 + $0x88] sm:$0xff] }
 0xed5   :  { %v1232_v31 = vmul.f32 %v1886_v27, %v1224_v29  ;;  %v1913_v27 = vld [vmem:[%s3017_s10 + $0x80] sm:$0xff]  ;;  %v1915_v29 = vld [vmem:[%s3017_s10 + $0x90] sm:$0xff] }
 0xed7   :  { %2180 = vmatprep.mubr.msk.f32.mxu1 %vm140_vm1, %v1232_v31  ;;  %v2390_v31 = vpack.c.bf16 %v1914_v28, %v1913_v27 }
 0xed8   :  { %2181 = vmatmul.mubr.msk.f32.vlgmr.msra.gmra.mrb[16].mxu1 %vm140_vm1, %v1233_v32  ;;  %v1916_v32 = vld [vmem:[%s3017_s10 + $0x98] sm:$0xff] }
 0xfab   :  { %v2182_v33 = vpop.f32.mrb[16].mxu1 }
 0xfac   :  { %v1311_v34 = vpop.f32.mrb[17].mxu1 }
 0xfad   :  { %v2449_v35 = vpack.i.bf16 %v2182_v33, %v1311_v34  ;;  %2187 = vmatprep.mubr.msk.f32.mxu1 %vm140_vm1, %v1311_v34  ;;  %v1917_v34 = vld [vmem:[%s3017_s10 + $0xa0] sm:$0xff] }
 0xfaf   :  { %2445 = vrot.lane.b32.xlu0 %v2449_v35, %s2519_s23 }
0x1021   :  { %v2446_v36 = vpop.permute.xlu0 %2445 }
0x1022   :  { %v2448_v37 = vunpack.i.h.bf16 %v2446_v36  ;;  %v2447_v38 = vunpack.i.l.bf16 %v2446_v36 }
0x1024   :  { %v2364_v40 = vpack.c.bf16 %v2448_v37, %v2447_v38 }
0x1026   :  { %2366 = vmatprep.subr.msk.bf16.mxu1 %vm2625_vm2, %v2364_v40 }
0x1027   :  { %2369 = vmatpush3.bf16.xpose.msk.msra.mxu1 %vm2625_vm2, %v2364_v40 }
0x102e   :  { %2188 = vmatmul.mubr.msk.f32.vlgmr.msra.gmra.mrb[18].mxu1 %vm140_vm1, %v2182_v33  ;;  %v2394_v33 = vpack.c.bf16 %v1916_v32, %v1915_v29 }
0x1101   :  { %v2189_v41 = vpop.f32.mrb[18].mxu1 }
0x1102   :  { %v1400_v43 = vpop.f32.mrb[19].mxu1  ;;  %v1410_v44 = vmul.f32 0.17677669, %v2189_v41 }
0x1103   :  { %v1409_v45 = vmul.f32 0.17677669, %v1400_v43 }
0x1104   :  { %v1412_v48 = vadd.f32 %v1410_v44, %v2712_v42  ;;  %v1899_v42 = vld [vmem:[%s3014_s7 + $0x20] sm:$0xff] }
0x1105   :  { %v1411_v46 = vadd.f32 %v1409_v45, %v2707_v39  ;;  %v2374_v60 = vpack.c.bf16 %v1900_v58, %v1899_v42  ;;  %v1925_v58 = vld [vmem:[%s3017_s10 + $0xe0] sm:$0xff] }
0x1106   :  { %v1416_v49 = vsel %vm239_vm3, %v1412_v48, -inf }
0x1107   :  { %v1413_v47 = vsel %vm239_vm3, %v1411_v46, -inf  ;;  %2375 = vmatprep.subr.bf16.mxu0 %v2374_v60 }
0x1108   :  { %1414 = vmax.xlane.f32.xlu1 %v1413_v47  ;;  %2377 = vmatpush3.bf16.msra.mxu0 %v2374_v60  ;;  %v1906_v47 = vld [vmem:[%s3015_s8 + $0x1] ss:$0 sm:$0xff]  ;;  %v2414_v60 = vpack.c.bf16 %v1926_v59, %v1925_v58 }
0x1109   :  { %2379 = vmatprep.subr.bf16.mxu0 %v2378_v18 }
0x110c   :  { %1417 = vmax.xlane.f32.xlu1 %v1416_v49  ;;  %2381 = vmatpush3.bf16.msra.mxu0 %v2378_v18  ;;  %v1928_v18 = vld [vmem:[%s3017_s10 + $0xf8] sm:$0xff] }
0x110d   :  { %2391 = vmatprep.subr.bf16.mxu0 %v2390_v31 }
0x1195   :  { %v1415_v50 = vpop.xlane.xlu1 %1414 }
0x1196   :  { %v1419_v51 = vsub.f32 %v1411_v46, %v1415_v50 }
0x1198   :  { %v1421_v53 = vmul.f32 1.442695, %v1419_v51 }
0x1199   :  { %v1418_v16 = vpop.xlane.xlu1 %1417 }
0x119a   :  { %v1420_v52 = vsub.f32 %v1412_v48, %v1418_v16  ;;  %v1919_v16 = vld [vmem:[%s3017_s10 + $0xb0] sm:$0xff] }
0x119c   :  { %v1423_v54 = vmul.f32 1.442695, %v1420_v52  ;;  %v1920_v52 = vld [vmem:[%s3017_s10 + $0xb8] sm:$0xff] }
0x119e   :  { %2478 = vpow2.f32 %v1423_v54  ;;  %v1921_v54 = vld [vmem:[%s3017_s10 + $0xc0] sm:$0xff] }
0x119f   :  { %2480 = vpow2.f32 %v1421_v53  ;;  %v2402_v53 = vpack.c.bf16 %v1920_v52, %v1919_v16 }
0x11a8   :  { %v2479_v55 = vpop.eup %2478 }
0x11a9   :  { %v1428_v56 = vsel %vm239_vm3, %v2479_v55, 0.0  ;;  %v2481_v39 = vpop.eup %2480 }
0x11aa   :  { %1429 = vadd.xlane.f32.xlu1 %v1428_v56  ;;  %v1425_v57 = vsel %vm239_vm3, %v2481_v39, 0.0 }
0x11ae   :  { %1426 = vadd.xlane.f32.xlu1 %v1425_v57  ;;  %v1924_v57 = vld [vmem:[%s3017_s10 + $0xd8] sm:$0xff] }
0x11bf   :  { %2450 = vrot.lane.b32.xlu1 %v2449_v35, %s2520_s11  ;;  %v1918_v35 = vld [vmem:[%s3017_s10 + $0xa8] sm:$0xff] }
0x11c0   :  { %v2398_v36 = vpack.c.bf16 %v1918_v35, %v1917_v34 }
0x1237   :  { %v1430_v62 = vpop.xlane.xlu1 %1429 }
0x1238   :  { %2482 = vrcp.f32 %v1430_v62  ;;  %v2418_v62 = vpack.c.bf16 %v1928_v18, %v1927_v19 }
0x123b   :  { %v1427_v63 = vpop.xlane.xlu1 %1426 }
0x123c   :  { %2484 = vrcp.f32 %v1427_v63 }
0x123f   :  { %v2451_v0 = vpop.permute.xlu1 %2450 }
0x1240   :  { %v2453_v3 = vunpack.i.h.bf16 %v2451_v0  ;;  %v2452_v4 = vunpack.i.l.bf16 %v2451_v0 }
0x1242   :  { %v2370_v5 = vpack.c.bf16 %v2453_v3, %v2452_v4  ;;  %v2483_v8 = vpop.eup %2482 }
0x1243   :  { %v1434_v11 = vmul.f32 %v2483_v8, %v2479_v55  ;;  %v1922_v55 = vld [vmem:[%s3017_s10 + $0xc8] sm:$0xff] }
0x1244   :  { %2371 = vmatprep.subr.bf16.mxu1 %v2370_v5  ;;  %v2406_v56 = vpack.c.bf16 %v1922_v55, %v1921_v54 }
0x1245   :  { %2373 = vmatpush3.bf16.msra.mxu1 %v2370_v5 }
0x1246   :  { %v2485_v9 = vpop.eup %2484 }
0x1247   :  { %v1433_v10 = vmul.f32 %v2485_v9, %v2481_v39  ;;  %v1923_v39 = vld [vmem:[%s3017_s10 + $0xd0] sm:$0xff]  ;;  %s2521_s10 = smov [#allocation2]  }
0x1248   :  { %v2410_v42 = vpack.c.bf16 %v1924_v57, %v1923_v39  ;;  %s1835_s29 = sshll.u32 %s2521_s10, 4  ;;  %s1836_s29 = int_to_ptr.vmem [resolvable:$true] %s1835_s29 }
0x1249   :  { %2194 = vmatprep.mubr.msk.f32.mxu1 %vm239_vm3, %v1433_v10  ;;  %s2494_s30 = scalar_lea.vmem %s1836_s29, 256  ;;  %p2499_p1 = scmp.lt.s32.totalorder %s1836_s29, %s1836_s29 }
0x124a   :  { %2195 = vmatmul.mubr.msk.f32.vlgmr.msra.gmra.mrb[20].mxu1 %vm239_vm3, %v1434_v11  ;;  %p2495_p0 = scmp.ne.s32.totalorder %s1836_s29, %s2494_s30  ;;  %p2500_p2 = scmp.lt.s32.totalorder %s2494_s30, %s2494_s30 }
0x124c   :  { %p2501_p3 = por %p2500_p2, %p2499_p1 }
0x124e   :  { %p2502_p4 = pnand %p2501_p3, %p2495_p0 }
0x131d   :  { %v2196_v30 = vpop.f32.mrb[20].mxu1 }
0x131e   :  { %v1513_v61 = vpop.f32.mrb[21].mxu1 }
0x131f   :  { %2205 = vmatprep.mubr.msk.f32.mxu0 %vm140_vm1, %v1513_v61 }
0x1320   :  { %2206 = vmatmul.mubr.msk.f32.vlgmr.msra.gmra.mrb[6].mxu0 %vm140_vm1, %v2196_v30 }
0x1321   :  { %2393 = vmatpush3.bf16.msra.mxu0 %v2390_v31 }
0x1322   :  { %2395 = vmatprep.subr.bf16.mxu0 %v2394_v33 }
0x1325   :  { %2397 = vmatpush3.bf16.msra.mxu0 %v2394_v33 }
0x1326   :  { %2399 = vmatprep.subr.bf16.mxu0 %v2398_v36 }
0x1329   :  { %2401 = vmatpush3.bf16.msra.mxu0 %v2398_v36 }
0x132a   :  { %2403 = vmatprep.subr.bf16.mxu0 %v2402_v53 }
0x132d   :  { %2405 = vmatpush3.bf16.msra.mxu0 %v2402_v53 }
0x132e   :  { %2407 = vmatprep.subr.bf16.mxu0 %v2406_v56 }
0x1331   :  { %2409 = vmatpush3.bf16.msra.mxu0 %v2406_v56 }
0x1332   :  { %2411 = vmatprep.subr.bf16.mxu0 %v2410_v42 }
0x1335   :  { %2413 = vmatpush3.bf16.msra.mxu0 %v2410_v42 }
0x1336   :  { %2415 = vmatprep.subr.bf16.mxu0 %v2414_v60 }
0x1339   :  { %2417 = vmatpush3.bf16.msra.mxu0 %v2414_v60 }
0x133a   :  { %2419 = vmatprep.subr.bf16.mxu0 %v2418_v62 }
0x133d   :  { %2421 = vmatpush3.bf16.msra.mxu0 %v2418_v62 }
0x13f3   :  { %v2207_v12 = vpop.f32.mrb[6].mxu0 }
0x13f4   :  { %v2911_v13 = vadd.f32 %v2207_v12, %v2851_v6  ;;  %v1599_v14 = vpop.f32.mrb[7].mxu0  ;;  %v1907_v6 = vld [vmem:[%s3016_s9 + $0x20] sm:$0xff] }
0x13f5   :  { %v2914_v17 = vadd.f32 %v1599_v14, %v2853_v7  ;;  %v1908_v7 = vld [vmem:[%s3016_s9 + $0x28] sm:$0xff] }
0x13f6   :  { %v1613_v21 = vmul.f32 %v2911_v13, %v2911_v13  ;;  %v2382_v2 = vpack.c.bf16 %v1908_v7, %v1907_v6  ;;  %v2422_v14 = vadd.f32 %v2911_v13, %v2738_v15 }
0x13f7   :  { %v1612_v22 = vmul.f32 %v2914_v17, %v2914_v17 }
0x13f8   :  { %v1617_v23 = vsel %vm140_vm1, %v1613_v21, 0.0  ;;  %2383 = vmatprep.subr.bf16.mxu1 %v2382_v2 }
0x13f9   :  { %1618 = vadd.xlane.f32.xlu1 %v1617_v23  ;;  %v1614_v24 = vsel %vm140_vm1, %v1612_v22, 0.0  ;;  %2385 = vmatpush3.bf16.msra.mxu1 %v2382_v2  ;;  %v2424_v22 = vadd.f32 %v2914_v17, %v2741_v20 }
0x13fa   :  { %1615 = vadd.xlane.f32.xlu0 %v1614_v24  ;;  %2387 = vmatprep.subr.bf16.mxu1 %v2386_v26 }
0x13fd   :  { %2389 = vmatpush3.bf16.msra.mxu1 %v2386_v26 }
0x1486   :  { %v1619_v37 = vpop.xlane.xlu1 %1618 }
0x1487   :  { %v1621_v38 = vmul.f32 0.03125, %v1619_v37  ;;  %v1616_v40 = vpop.xlane.xlu0 %1615 }
0x1488   :  { %v1620_v41 = vmul.f32 0.03125, %v1616_v40 }
0x1489   :  { %v1623_v43 = vadd.f32 1e-06, %v1621_v38 }
0x148a   :  { %v1622_v44 = vadd.f32 1e-06, %v1620_v41 }
0x148b   :  { %2486 = vrsqrt.f32 %v1623_v43 }
0x148c   :  { %2488 = vrsqrt.f32 %v1622_v44 }
0x1495   :  { %v2487_v45 = vpop.eup %2486 }
0x1496   :  { %v2489_v46 = vpop.eup %2488  ;;  %v1627_v48 = vmul.f32 %v2487_v45, %v2911_v13 }
0x1497   :  { %v1626_v49 = vmul.f32 %v2489_v46, %v2914_v17 }
0x1498   :  { %v1635_v51 = vmul.f32 %v1906_v47, %v1627_v48 }
0x1499   :  { %v1634_v50 = vmul.f32 %v1906_v47, %v1626_v49 }
0x149b   :  { %2216 = vmatprep.mubr.msk.f32.mxu1 %vm140_vm1, %v1634_v50 }
0x149c   :  { %2217 = vmatmul.mubr.msk.f32.vlgmr.msra.gmra.mrb[22].mxu1 %vm140_vm1, %v1635_v51 }
0x156f   :  { %v2218_v63 = vpop.f32.mrb[22].mxu1 }
0x1570   :  { %v1723_v0 = vmul.f32 0.5, %v2218_v63  ;;  %v1713_v3 = vpop.f32.mrb[23].mxu1 }
0x1571   :  { %v1722_v4 = vmul.f32 0.5, %v1713_v3 }
0x1572   :  { %2490 = vtanh.f32 %v1723_v0 }
0x1573   :  { %2492 = vtanh.f32 %v1722_v4 }
0x157c   :  { %v2491_v5 = vpop.eup %2490 }
0x157d   :  { %v2493_v8 = vpop.eup %2492  ;;  %v1727_v9 = vadd.f32 1.0, %v2491_v5 }
0x157e   :  { %v1726_v10 = vadd.f32 1.0, %v2493_v8 }
0x157f   :  { %v1729_v11 = vmul.f32 0.5, %v1727_v9 }
0x1580   :  { %v1728_v30 = vmul.f32 0.5, %v1726_v10 }
0x1581   :  { %v1731_v12 = vmul.f32 %v2218_v63, %v1729_v11 }
0x1582   :  { %v1730_v61 = vmul.f32 %v1728_v30, %v1713_v3 }
0x1584   :  { %2251 = vmatprep.mubr.f32.mxu0 %v1730_v61 }
0x1585   :  { %2252 = vmatmul.mubr.f32.vlgmr.msra.gmra.mrb[4].mxu0 %v1731_v12 }
0x1658   :  { %v2253_v21 = vpop.f32.mrb[4].mxu0 }
0x1659   :  { %v2423_v23 = vadd.f32 %v2422_v14, %v2253_v21  ;;  %v1815_v24 = vpop.f32.mrb[5].mxu0 }
0x165a   :  { %v2425_v6 = vadd.f32 %v2424_v22, %v1815_v24 }
0x165b   :  { %1829 = vst.msk [vmem:[#allocation2 + $0x8] sm:$0xff] %vm140_vm1, %v2423_v23 }
0x165c   :  { %1828 = vst.msk [vmem:[#allocation2] sm:$0xff] %vm140_vm1, %v2425_v6 }
0x165d   :  { %2505 = shalt.err (!%p2502_p4)
}
0x165e   :  { %s2506_s14 = scalar_lea.hbm %s3019_s12, 256 }
0x165f   :  { %p2507_p5 = scmp.ne.s32.totalorder %s3019_s12, %s2506_s14  ;;  %p2510_p6 = scmp.lt.u32.totalorder %s2506_s14, %s3019_s12 }
0x1661   :  { %p2512_p7 = pnand %p2510_p6, %p2507_p5 }
0x1663   :  { %2515 = shalt.err (!%p2512_p7)
}
0x1664   :  { %s2522_s23 = smov 128   ;;  %s2523_s2 = smov 8  }
0x1665   :  { %1841 = dma.vmem_to_hbm [thread:$0]  %s1836_s29, 256, %s3019_s12, [#allocation3], %s2522_s23, %s2522_s23, %s2523_s2  }
0x1666   :  { %2516 = dma.done.wait [#allocation3], 256  }
0x1667   :  { %2517 = vsyncadd [#allocation3], 4294967040 }
0x1668   :  { %1845 = vsyncpa [#allocation3], 1 }

</bundles_post_ra>
